<compile_context>
chip_gen: v5e
topology: v5e:2x2
jax: 0.10.0
libtpu: 0.0.40
codegen_flags: <defaults>
</compile_context>

<pallas_src>
import functools
import math

import jax
import jax.numpy as jnp
from jax.experimental import pallas as pl
from jax.experimental.pallas import tpu as pltpu

_LOG2PI = math.log(2.0 * math.pi)


def _pg_loss_kernel(states_ref, actions_ref, cumsum_ref, w_ref, b_ref,
                    out_ref, acc_ref, *,
                    n_rows, tile_rows, needs_mask, action_dim,
                    inv_ts, max_ent):
    i = pl.program_id(0)

    @pl.when(i == 0)
    def _init():
        acc_ref[...] = jnp.zeros_like(acc_ref)

    s = states_ref[...].astype(jnp.float32)          # [TN, Ds]
    a = actions_ref[...].astype(jnp.float32)         # [TN, Da]
    c = cumsum_ref[...].astype(jnp.float32)          # [TN, 1]

    # Policy mean via MXU matmul (tiny vs the HBM traffic for the states tile).
    mean = jnp.dot(s, w_ref[...].astype(jnp.float32),
                   preferred_element_type=jnp.float32)
    mean = mean + b_ref[...].astype(jnp.float32)     # [TN, Da]

    diff = a - mean
    sq = jnp.sum(diff * diff, axis=-1, keepdims=True)            # [TN, 1]
    # log(2*pi) term folded into one precomputed scalar constant.
    loglik = -0.5 * sq + (-0.5 * float(action_dim) * _LOG2PI)    # [TN, 1]

    # Advantage (Monte-Carlo).  Forward value matches torch's detached A_hat.
    # TODO(synk): A_hat is .detach()'d in torch; if this kernel is ever
    # differentiated, wrap a_hat in stop_gradient / a custom_vjp.
    if max_ent == 1:
        a_hat = -c - loglik
    else:
        a_hat = -c

    contrib = a_hat * loglik                                     # [TN, 1]

    if needs_mask:  # static: only emit the mask when the last tile overhangs N
        row = i * tile_rows + jax.lax.broadcasted_iota(
            jnp.int32, (tile_rows, 1), 0)
        contrib = jnp.where(row < n_rows, contrib, 0.0)

    # Per-tile partial of dot(A_hat, loglik), accumulated across the grid.
    acc_ref[...] += jnp.sum(contrib, axis=0, keepdims=True)      # [1, 1]

    @pl.when(i == pl.num_programs(0) - 1)
    def _finalize():
        out_ref[...] = acc_ref[...] * inv_ts


def pg_loss(state_tensor, action_tensor, reward_tensor, cumulative_rollout,
            policy_w, policy_b, *, trajectory_length, simulations, max_ent=0,
            tile_rows=2048):
    """JAX wrapper mirroring PG_LOSS.forward.

    state_tensor:        [S, T, Ds]
    action_tensor:       [S, T, Da]
    reward_tensor:       [S, T]      (unused, kept for signature parity)
    cumulative_rollout:  [S, T]
    policy_w:            [Ds, Da]
    policy_b:            [Da]
    """
    del reward_tensor  # unused in the torch forward as well
    S, T, Ds = state_tensor.shape
    Da = action_tensor.shape[-1]
    N = S * T

    # Glue: torch.flatten(start_dim=0, end_dim=1)
    flat_states = state_tensor.reshape(N, Ds)
    flat_actions = action_tensor.reshape(N, Da)
    flat_cumsum = cumulative_rollout.reshape(N, 1)
    w = policy_w
    b = policy_b.reshape(1, Da)

    # Row tile: multiple of 8 sublanes, large enough to amortize the ~0.35 us
    # per-step pipeline overhead, small enough that the double-buffered tiles
    # stay at a few hundred KiB of VMEM.
    tn = min(int(tile_rows), ((N + 7) // 8) * 8)
    num_tiles = pl.cdiv(N, tn)
    needs_mask = (num_tiles * tn) != N  # boundary tile overhangs -> mask rows

    kernel = functools.partial(
        _pg_loss_kernel,
        n_rows=N,
        tile_rows=tn,
        needs_mask=needs_mask,
        action_dim=Da,
        inv_ts=1.0 / (float(trajectory_length) * float(simulations)),
        max_ent=max_ent,
    )

    out = pl.pallas_call(
        kernel,
        out_shape=jax.ShapeDtypeStruct((1, 1), jnp.float32),
        grid=(num_tiles,),
        in_specs=[
            pl.BlockSpec((tn, Ds), lambda i: (i, 0)),   # states tile
            pl.BlockSpec((tn, Da), lambda i: (i, 0)),   # actions tile
            pl.BlockSpec((tn, 1), lambda i: (i, 0)),    # cumulative rollout tile
            pl.BlockSpec((Ds, Da), lambda i: (0, 0)),   # W: resident across grid
            pl.BlockSpec((1, Da), lambda i: (0, 0)),    # b: resident across grid
        ],
        out_specs=pl.BlockSpec((1, 1), lambda i: (0, 0)),
        scratch_shapes=[pltpu.VMEM((1, 1), jnp.float32)],
        compiler_params=pltpu.CompilerParams(
            dimension_semantics=("arbitrary",)),  # reduction axis (accumulator)
    )(flat_states, flat_actions, flat_cumsum, w, b)
    return out[0, 0]


def _reference(state_tensor, action_tensor, cumulative_rollout, w, b,
               trajectory_length, simulations, max_ent):
    S, T, Ds = state_tensor.shape
    Da = action_tensor.shape[-1]
    N = S * T
    s = state_tensor.reshape(N, Ds).astype(jnp.float32)
    a = action_tensor.reshape(N, Da).astype(jnp.float32)
    c = cumulative_rollout.reshape(N).astype(jnp.float32)
    mean = s @ w + b
    loglik = -0.5 * jnp.sum((a - mean) ** 2 + jnp.log(2.0 * jnp.pi), axis=-1)
    a_hat = (-c - loglik) if max_ent == 1 else (-c)
    return jnp.dot(a_hat, loglik) / trajectory_length / simulations


if __name__ == "__main__":
    # Small, deterministic shapes consistent with the module.
    simulations = 2
    trajectory_length = 8
    state_dim = 32
    action_dim = 8

    key = jax.random.PRNGKey(0)
    k1, k2, k3, k4, k5, k6 = jax.random.split(key, 6)

    state_tensor = jax.random.normal(
        k1, (simulations, trajectory_length, state_dim), dtype=jnp.float32)
    action_tensor = jax.random.normal(
        k2, (simulations, trajectory_length, action_dim), dtype=jnp.float32)
    reward_tensor = jax.random.normal(
        k3, (simulations, trajectory_length), dtype=jnp.float32)
    cumulative_rollout = jax.random.normal(
        k4, (simulations, trajectory_length), dtype=jnp.float32)

    # Deterministic synthetic policy parameters (linear-Gaussian policy).
    policy_w = 0.1 * jax.random.normal(k5, (state_dim, action_dim), dtype=jnp.float32)
    policy_b = 0.1 * jax.random.normal(k6, (action_dim,), dtype=jnp.float32)

    out = pg_loss(state_tensor, action_tensor, reward_tensor, cumulative_rollout,
                  policy_w, policy_b,
                  trajectory_length=trajectory_length,
                  simulations=simulations,
                  max_ent=1)
    out = jax.block_until_ready(out)

    ref = _reference(state_tensor, action_tensor, cumulative_rollout,
                     policy_w, policy_b.reshape(1, -1),
                     trajectory_length, simulations, max_ent=1)
    assert jnp.allclose(out, ref, rtol=1e-5, atol=1e-5), (out, ref)

    # Also exercise multiple grid steps + an overhanging (masked) boundary tile
    # and the max_ent=0 path.
    simulations2, trajectory_length2 = 5, 37          # N = 185 -> 3 tiles of 64
    kk = jax.random.split(jax.random.PRNGKey(1), 4)
    st2 = jax.random.normal(kk[0], (simulations2, trajectory_length2, state_dim), jnp.float32)
    ac2 = jax.random.normal(kk[1], (simulations2, trajectory_length2, action_dim), jnp.float32)
    rw2 = jax.random.normal(kk[2], (simulations2, trajectory_length2), jnp.float32)
    cs2 = jax.random.normal(kk[3], (simulations2, trajectory_length2), jnp.float32)
    for me in (1, 0):
        out2 = pg_loss(st2, ac2, rw2, cs2, policy_w, policy_b,
                       trajectory_length=trajectory_length2,
                       simulations=simulations2, max_ent=me, tile_rows=64)
        out2 = jax.block_until_ready(out2)
        ref2 = _reference(st2, ac2, cs2, policy_w, policy_b.reshape(1, -1),
                          trajectory_length2, simulations2, max_ent=me)
        assert jnp.allclose(out2, ref2, rtol=1e-5, atol=1e-5), (me, out2, ref2)

    print("KERNEL_OK")
</pallas_src>

<mosaic_0001>
module attributes {stable_mosaic.version = 11 : i64} {
  func.func @_pg_loss_kernel(%arg0: i32, %arg1: memref<16x32xf32, #tpu.memory_space<vmem>>, %arg2: memref<16x8xf32, #tpu.memory_space<vmem>>, %arg3: memref<16x1xf32, #tpu.memory_space<vmem>>, %arg4: memref<32x8xf32, #tpu.memory_space<vmem>>, %arg5: memref<1x8xf32, #tpu.memory_space<vmem>>, %arg6: memref<1x1xf32, #tpu.memory_space<vmem>>, %arg7: memref<1x1xf32, #tpu.memory_space<vmem>>) attributes {dimension_semantics = [#tpu.dimension_semantics<arbitrary>], iteration_bounds = array<i64: 1>, scalar_prefetch = 0 : i64, scratch_operands = 1 : i64, tpu.core_type = #tpu.core_type<tc>, window_params = [{transform_indices = @transform_0, window_bounds = array<i64: 16, 32>}, {transform_indices = @transform_1, window_bounds = array<i64: 16, 8>}, {transform_indices = @transform_2, window_bounds = array<i64: 16, 1>}, {pipeline_mode = #tpu.pipeline_mode<synchronous>, transform_indices = @transform_3, window_bounds = array<i64: 32, 8>}, {pipeline_mode = #tpu.pipeline_mode<synchronous>, transform_indices = @transform_4, window_bounds = array<i64: 1, 8>}, {pipeline_mode = #tpu.pipeline_mode<synchronous>, transform_indices = @transform_5, window_bounds = array<i64: 1, 1>}]} {
    %c0_i32 = arith.constant 0 : i32
    %0 = arith.cmpi eq, %arg0, %c0_i32 : i32
    %1 = arith.extui %0 : i1 to i32
    %c0_i32_0 = arith.constant 0 : i32
    %2 = arith.cmpi ne, %1, %c0_i32_0 : i32
    scf.if %2 {
      %cst_21 = arith.constant 0.000000e+00 : f32
      %31 = vector.broadcast %cst_21 : f32 to vector<1x1xf32>
      %c0_22 = arith.constant 0 : index
      %c0_23 = arith.constant 0 : index
      %32 = vector.load %arg7[%c0_22, %c0_23] : memref<1x1xf32, #tpu.memory_space<vmem>>, vector<1x1xf32>
      tpu.vector_store %arg7[%c0_22, %c0_23], %31 {strides = array<i32>} : memref<1x1xf32, #tpu.memory_space<vmem>>, vector<1x1xf32>,
    } else {
    }
    %c0 = arith.constant 0 : index
    %c0_1 = arith.constant 0 : index
    %3 = vector.load %arg1[%c0, %c0_1] : memref<16x32xf32, #tpu.memory_space<vmem>>, vector<16x32xf32>
    %c0_2 = arith.constant 0 : index
    %c0_3 = arith.constant 0 : index
    %4 = vector.load %arg2[%c0_2, %c0_3] : memref<16x8xf32, #tpu.memory_space<vmem>>, vector<16x8xf32>
    %c0_4 = arith.constant 0 : index
    %c0_5 = arith.constant 0 : index
    %5 = vector.load %arg3[%c0_4, %c0_5] : memref<16x1xf32, #tpu.memory_space<vmem>>, vector<16x1xf32>
    %c0_6 = arith.constant 0 : index
    %c0_7 = arith.constant 0 : index
    %6 = vector.load %arg4[%c0_6, %c0_7] : memref<32x8xf32, #tpu.memory_space<vmem>>, vector<32x8xf32>
    %cst = arith.constant dense<0.000000e+00> : vector<16x8xf32>
    %7 = tpu.matmul %3, %6, %cst {dimension_numbers = #tpu.dot_dimension_numbers<[1], [0], [0], [1], [0, 0, 1, 1], [], []>} : vector<16x32xf32>, vector<32x8xf32>, vector<16x8xf32> -> vector<16x8xf32>
    %c0_8 = arith.constant 0 : index
    %c0_9 = arith.constant 0 : index
    %8 = vector.load %arg5[%c0_8, %c0_9] : memref<1x8xf32, #tpu.memory_space<vmem>>, vector<1x8xf32>
    %9 = vector.broadcast %8 : vector<1x8xf32> to vector<16x8xf32>
    %10 = arith.addf %7, %9 : vector<16x8xf32>
    %11 = arith.subf %4, %10 : vector<16x8xf32>
    %12 = arith.mulf %11, %11 : vector<16x8xf32>
    %cst_10 = arith.constant dense<0.000000e+00> : vector<16xf32>
    %13 = vector.multi_reduction <add>, %12, %cst_10 [1] : vector<16x8xf32> to vector<16xf32>
    %14 = vector.shape_cast %13 : vector<16xf32> to vector<16x1xf32>
    %cst_11 = arith.constant -5.000000e-01 : f32
    %15 = vector.broadcast %cst_11 : f32 to vector<16x1xf32>
    %16 = arith.mulf %15, %14 : vector<16x1xf32>
    %cst_12 = arith.constant -7.35150814 : f32
    %17 = vector.broadcast %cst_12 : f32 to vector<16x1xf32>
    %18 = arith.addf %16, %17 : vector<16x1xf32>
    %cst_13 = arith.constant 0.000000e+00 : f32
    %19 = vector.broadcast %cst_13 : f32 to vector<16x1xf32>
    %20 = arith.subf %19, %5 : vector<16x1xf32>
    %21 = arith.subf %20, %18 : vector<16x1xf32>
    %22 = arith.mulf %21, %18 : vector<16x1xf32>
    %c0_14 = arith.constant 0 : index
    %c0_15 = arith.constant 0 : index
    %23 = vector.load %arg7[%c0_14, %c0_15] : memref<1x1xf32, #tpu.memory_space<vmem>>, vector<1x1xf32>
    %cst_16 = arith.constant dense<0.000000e+00> : vector<1xf32>
    %24 = vector.multi_reduction <add>, %22, %cst_16 [0] : vector<16x1xf32> to vector<1xf32>
    %25 = vector.shape_cast %24 : vector<1xf32> to vector<1x1xf32>
    %26 = arith.addf %23, %25 : vector<1x1xf32>
    %c0_17 = arith.constant 0 : index
    %c0_18 = arith.constant 0 : index
    %27 = vector.load %arg7[%c0_17, %c0_18] : memref<1x1xf32, #tpu.memory_space<vmem>>, vector<1x1xf32>
    tpu.vector_store %arg7[%c0_17, %c0_18], %26 {strides = array<i32>} : memref<1x1xf32, #tpu.memory_space<vmem>>, vector<1x1xf32>,
    %c0_i32_19 = arith.constant 0 : i32
    %28 = arith.cmpi eq, %arg0, %c0_i32_19 : i32
    %29 = arith.extui %28 : i1 to i32
    %c0_i32_20 = arith.constant 0 : i32
    %30 = arith.cmpi ne, %29, %c0_i32_20 : i32
    scf.if %30 {
      %c0_21 = arith.constant 0 : index
      %c0_22 = arith.constant 0 : index
      %31 = vector.load %arg7[%c0_21, %c0_22] : memref<1x1xf32, #tpu.memory_space<vmem>>, vector<1x1xf32>
      %cst_23 = arith.constant 6.250000e-02 : f32
      %32 = vector.broadcast %cst_23 : f32 to vector<1x1xf32>
      %33 = arith.mulf %31, %32 : vector<1x1xf32>
      %c0_24 = arith.constant 0 : index
      %c0_25 = arith.constant 0 : index
      %34 = vector.load %arg6[%c0_24, %c0_25] : memref<1x1xf32, #tpu.memory_space<vmem>>, vector<1x1xf32>
      tpu.vector_store %arg6[%c0_24, %c0_25], %33 {strides = array<i32>} : memref<1x1xf32, #tpu.memory_space<vmem>>, vector<1x1xf32>,
    } else {
    }
    return
  }
  func.func @transform_0(%arg0: i32) -> (i32, i32) {
    %c0_i32 = arith.constant 0 : i32
    %c0_i32_0 = arith.constant 0 : i32
    return %arg0, %c0_i32 : i32, i32
  }
  func.func @transform_1(%arg0: i32) -> (i32, i32) {
    %c0_i32 = arith.constant 0 : i32
    %c0_i32_0 = arith.constant 0 : i32
    return %arg0, %c0_i32 : i32, i32
  }
  func.func @transform_2(%arg0: i32) -> (i32, i32) {
    %c0_i32 = arith.constant 0 : i32
    %c0_i32_0 = arith.constant 0 : i32
    return %arg0, %c0_i32 : i32, i32
  }
  func.func @transform_3(%arg0: i32) -> (i32, i32) {
    %c0_i32 = arith.constant 0 : i32
    %c0_i32_0 = arith.constant 0 : i32
    %c0_i32_1 = arith.constant 0 : i32
    return %c0_i32, %c0_i32_0 : i32, i32
  }
  func.func @transform_4(%arg0: i32) -> (i32, i32) {
    %c0_i32 = arith.constant 0 : i32
    %c0_i32_0 = arith.constant 0 : i32
    %c0_i32_1 = arith.constant 0 : i32
    return %c0_i32, %c0_i32_0 : i32, i32
  }
  func.func @transform_5(%arg0: i32) -> (i32, i32) {
    %c0_i32 = arith.constant 0 : i32
    %c0_i32_0 = arith.constant 0 : i32
    %c0_i32_1 = arith.constant 0 : i32
    return %c0_i32, %c0_i32_0 : i32, i32
  }
}

</mosaic_0001>

<bundles_post_ra>
// kernel: tpu_custom_call.1
= control target key start
LH: loop header
LB: loop body
LE: loop exit
PB: predicated region body
PF: predicated region fallthrough
CT: control target
= control target key end

     0   :  { %s234_s0 = inlined_call_operand.vmem [shape: f32[16,32], index: 0, kind: input, shape index: {}]   ;;  %s235_s1 = inlined_call_operand.vmem [shape: f32[16,8], index: 1, kind: input, shape index: {}]   ;;  %s236_s2 = inlined_call_operand.vmem [shape: f32[16,1], index: 2, kind: input, shape index: {}]   ;;  %s237_s3 = inlined_call_operand.vmem [shape: f32[32,8], index: 3, kind: input, shape index: {}]   ;;  %s238_s4 = inlined_call_operand.vmem [shape: f32[1,8], index: 4, kind: input, shape index: {}]   ;;  %s239_s5 = inlined_call_operand.hbm [shape: f32[1,1], index: 5, kind: output, shape index: {}]  }
   0x1   :  { %v36_v0 = vld [vmem:[%s237_s3 + $0x18] sm:$0xff]  ;;  %v35_v1 = vld [vmem:[%s237_s3 + $0x10] sm:$0xff]  ;;  %v34_v2 = vld [vmem:[%s237_s3 + $0x8] sm:$0xff] }
   0x2   :  { %60 = vmatpush.msra.mxu0 %v36_v0  ;;  %130 = vmatpush.msra.mxu1 %v36_v0 }
   0x3   :  { %10 = vsyncpa [#allocation4], 0  ;;  %v33_v3 = vld [vmem:[%s237_s3] sm:$0xff]  ;;  %vm41_vm0 = vcmask 261120   ;;  %v28_v5 = vld [vmem:[%s234_s0 + $0x8] sm:$0xff]  ;;  %vm75_vm1 = vcmask 64512  }
   0x4   :  { %61 = vmatpush.msra.mxu0 %v35_v1  ;;  %131 = vmatpush.msra.mxu1 %v35_v1  ;;  %v27_v4 = vld [vmem:[%s234_s0] sm:$0xff]  ;;  %v30_v12 = vld [vmem:[%s235_s1 + $0x8] sm:$0xff]  ;;  %vm25_vm2 = vcmask 0   ;;  %v163_v19 = vmov 0.0   ;;  %vm93_vm3 = vcmask 7168   ;;  %s119_s14 = sshll.u32 %s239_s5, 4  ;;  %s120_s14 = int_to_ptr.hbm [resolvable:$true] %s119_s14 }
   0x5   :  { %v136_v6 = vld [vmem:[%s238_s4] ss:$0 sm:$0xff]  ;;  %26 = vst.msk [vmem:[#allocation2] sm:$0x1] %vm25_vm2, %v163_v19  ;;  %v32_v25 = vld [vmem:[%s236_s2 + $0x8] sm:$0xff] }
   0x6   :  { %62 = vmatpush.msra.mxu0 %v34_v2  ;;  %132 = vmatpush.msra.mxu1 %v34_v2  ;;  %v29_v9 = vld [vmem:[%s235_s1] sm:$0xff]  ;;  %v87_v28 = vsub.f32 0.0, %v32_v25 }
   0x7   :  { %v31_v22 = vld [vmem:[%s236_s2] sm:$0xff]  ;;  %s164_s2 = smov [#allocation3]  }
   0x8   :  { %63 = vmatpush.msra.mxu0 %v33_v3  ;;  %133 = vmatpush.msra.mxu1 %v33_v3  ;;  %v86_v23 = vsub.f32 0.0, %v31_v22  ;;  %s117_s11 = sshll.u32 %s164_s2, 4  ;;  %s118_s11 = int_to_ptr.vmem [resolvable:$true] %s117_s11 }
   0x9   :  { %128 = vmatmul.msk.f32.vlgmr.msra.gmra.mxu0 %vm41_vm0, %v27_v4  ;;  %129 = vmatmul.msk.f32.vlgmr.msra.gmra.mxu1 %vm41_vm0, %v28_v5 }
   0xc   :  { %v92_v42 = vld [vmem:[#allocation2] sm:$0x1] }
  0x86   :  { %v65_v7 = vpop.f32.mrf.mxu0  ;;  %v68_v8 = vpop.f32.mrf.mxu1 }
  0x87   :  { %v66_v10 = vadd.f32 %v136_v6, %v65_v7  ;;  %v69_v11 = vadd.f32 %v136_v6, %v68_v8 }
  0x89   :  { %v71_v13 = vsub.f32 %v29_v9, %v66_v10  ;;  %v72_v14 = vsub.f32 %v30_v12, %v69_v11 }
  0x8b   :  { %v73_v15 = vmul.f32 %v71_v13, %v71_v13  ;;  %v74_v17 = vmul.f32 %v72_v14, %v72_v14 }
  0x8d   :  { %v76_v16 = vsel %vm75_vm1, %v73_v15, 0.0  ;;  %v79_v18 = vsel %vm75_vm1, %v74_v17, 0.0 }
  0x8e   :  { %77 = vadd.xlane.f32.xlu0 %v76_v16 }
  0x96   :  { %80 = vadd.xlane.f32.xlu0 %v79_v18 }
 0x101   :  { %v78_v20 = vpop.xlane.xlu0 %77 }
 0x102   :  { %v82_v21 = vmul.f32 -0.5, %v78_v20 }
 0x104   :  { %v84_v24 = vadd.f32 -7.351508, %v82_v21 }
 0x106   :  { %v88_v27 = vsub.f32 %v86_v23, %v84_v24 }
 0x108   :  { %v90_v31 = vmul.f32 %v88_v27, %v84_v24 }
 0x109   :  { %v81_v26 = vpop.xlane.xlu0 %80 }
 0x10a   :  { %v83_v29 = vmul.f32 -0.5, %v81_v26  ;;  %v94_v34 = vsel %vm93_vm3, %v90_v31, 0.0 }
 0x10c   :  { %v85_v30 = vadd.f32 -7.351508, %v83_v29 }
 0x10e   :  { %v89_v32 = vsub.f32 %v87_v28, %v85_v30 }
 0x110   :  { %v91_v33 = vmul.f32 %v89_v32, %v85_v30 }
 0x112   :  { %v95_v35 = vsel %vm93_vm3, %v91_v33, 0.0 }
 0x113   :  { %v96_v36 = vadd.f32 %v95_v35, %v94_v34 }
 0x115   :  { %v97_v37 = vrot.slane %v96_v36, 4 }
 0x117   :  { %v98_v38 = vadd.f32 %v97_v37, %v96_v36 }
 0x119   :  { %v99_v39 = vrot.slane %v98_v38, 2 }
 0x11b   :  { %v100_v40 = vadd.f32 %v99_v39, %v98_v38 }
 0x11d   :  { %v101_v41 = vrot.slane %v100_v40, 1 }
 0x11f   :  { %v102_v43 = vadd.f32 %v101_v41, %v100_v40 }
 0x121   :  { %v103_v44 = vadd.f32 %v102_v43, %v92_v42 }
 0x123   :  { %105 = vst.msk [vmem:[#allocation2] sm:$0x1] %vm25_vm2, %v103_v44 }
 0x12a   :  { %v109_v45 = vld [vmem:[#allocation2] sm:$0x1] }
 0x12b   :  { %v110_v46 = vmul.f32 0.0625, %v109_v45 }
 0x12d   :  { %111 = vst.msk [vmem:[#allocation3] sm:$0x1] %vm25_vm2, %v110_v46 }
 0x12e   :  { %122 = dma.vmem_to_hbm [thread:$0]  %s118_s11, 16, %s120_s14, [#allocation4]  }
 0x12f   :  { %161 = dma.done.wait [#allocation4], 16  }
 0x130   :  { %162 = vsyncadd [#allocation4], 4294967280 }
 0x131   :  { %127 = vsyncpa [#allocation4], 1 }

</bundles_post_ra>
